<compile_context>
chip_gen: v5e
topology: v5e:2x2
jax: 0.10.0
libtpu: 0.0.40
codegen_flags: <defaults>
</compile_context>

<pallas_src>
import functools

import numpy as np
import jax
import jax.numpy as jnp
from jax.experimental import pallas as pl
from jax.experimental.pallas import tpu as pltpu


def _focal_ce_kernel(*refs, gamma, ignore_index, has_weight):
    if has_weight:
        preds_ref, target_ref, weight_ref, sum_ref, cnt_ref, acc_sum, acc_cnt = refs
    else:
        preds_ref, target_ref, sum_ref, cnt_ref, acc_sum, acc_cnt = refs
        weight_ref = None

    j = pl.program_id(2)

    @pl.when(j == 0)
    def _init():
        acc_sum[...] = jnp.zeros_like(acc_sum)
        acc_cnt[...] = jnp.zeros_like(acc_cnt)

    x = preds_ref[0].astype(jnp.float32)      # (C, tile_p): classes on sublanes
    t = target_ref[0]                         # (1, tile_p) int32

    # numerically-stable log-softmax along the class (sublane) axis.
    # Only ONE exp over the (C, tile_p) slab; pt is rederived from it below
    # (no second exp(logpt)) to relieve the EUP slot.
    m = jnp.max(x, axis=0, keepdims=True)                       # (1, tile_p)
    z = x - m
    ez = jnp.exp(z)                                             # (C, tile_p)
    sum_ez = jnp.sum(ez, axis=0, keepdims=True)                 # (1, tile_p)
    lse = jnp.log(sum_ez)                                       # (1, tile_p)

    # one-hot gather of the target-class logit / prob (and optional weight)
    cls = jax.lax.broadcasted_iota(jnp.int32, x.shape, 0)       # (C, tile_p)
    onehot = cls == t                                           # (C, tile_p)
    z_t = jnp.sum(jnp.where(onehot, z, 0.0), axis=0, keepdims=True)
    ez_t = jnp.sum(jnp.where(onehot, ez, 0.0), axis=0, keepdims=True)
    logpt = z_t - lse                                           # (1, tile_p)
    # exact reciprocal (approx=True trades ~1e-4-level accuracy; keep exact)
    pt = ez_t * pl.reciprocal(sum_ez, approx=False)

    # compile-time specialization of the focal modulation (gamma is static)
    one_minus_pt = 1.0 - pt
    if gamma == 0.0:
        focal = jnp.ones_like(pt)
    elif gamma == 1.0:
        focal = one_minus_pt
    elif gamma == 2.0:
        focal = one_minus_pt * one_minus_pt
    else:
        # clamp: pt can exceed 1.0 by a few ULP -> NaN for fractional gamma
        focal = jnp.maximum(one_minus_pt, 0.0) ** gamma
    loss = -focal * logpt

    if has_weight:
        w = weight_ref[...].astype(jnp.float32)                 # (C, 1)
        wt = jnp.sum(jnp.where(onehot, w, 0.0), axis=0, keepdims=True)
        loss = loss * wt

    # Targets were padded with ignore_index in the wrapper, so a single compare
    # masks ignored pixels AND the ragged/undefined tail of the last tile.
    keep = t != ignore_index

    # per-lane partial accumulation; the cross-lane reduce runs once per (b, s)
    acc_sum[...] += jnp.where(keep, loss, 0.0)
    acc_cnt[...] += keep.astype(jnp.float32)

    @pl.when(j == pl.num_programs(2) - 1)
    def _finalize():
        sum_ref[...] = jnp.broadcast_to(jnp.sum(acc_sum[...]), sum_ref.shape)
        cnt_ref[...] = jnp.broadcast_to(jnp.sum(acc_cnt[...]), cnt_ref.shape)


def focal_ce_loss(preds, target, *, gamma=1.0, size_average=True,
                  ignore_index=-100, weight=None,
                  vmem_budget_bytes=None, max_tile_pixels=None,
                  logits_buffer_count=None):
    """JAX/Pallas equivalent of FocalCELoss.forward(preds, target)."""
    preds = jnp.asarray(preds)
    target = jnp.asarray(target)

    if preds.ndim > 2:
        # NCHW logits: merging trailing spatial dims is a free reshape (no HBM
        # copy); classes already sit on their own axis, so no transpose of the
        # big tensor is needed.
        B, C = preds.shape[0], preds.shape[1]
        P = int(np.prod(preds.shape[2:]))
        x = preds.reshape(B, C, P)
        t = target.reshape(B, 1, P).astype(jnp.int32)
    else:
        # (M, C) logits fallback.  NOTE: the wrapper-side transpose is a full
        # extra HBM round-trip of the logits (~2x traffic on this mem-bound
        # path); the segmentation (4-D) path above is copy-free.
        # TODO(synk): add a classes-on-lanes kernel variant for the 2-D path.
        M, C = preds.shape
        B, P = 1, M
        x = preds.T.reshape(1, C, M)
        t = target.reshape(1, 1, M).astype(jnp.int32)

    # --- VMEM-aware tile sizing -------------------------------------------
    try:
        vmem_capacity = int(pltpu.get_tpu_info().vmem_capacity_bytes)
    except Exception:
        vmem_capacity = None

    if vmem_budget_bytes is None:
        vmem_budget_bytes = (int(0.4 * vmem_capacity) if vmem_capacity
                             else 16 * 1024 * 1024)
    if vmem_capacity:
        # never let a user-supplied budget exceed the physical cap (v7x: 64 MiB)
        vmem_budget_bytes = min(vmem_budget_bytes, int(0.45 * vmem_capacity))

    # per-pixel VMEM columns (sublane-padded to 32-byte columns):
    #   2x double-buffered logits block in the INPUT dtype,
    #   ~4 full-depth f32 temporaries (post-cast working set),
    #   double-buffered int32 targets, 2 f32 accumulators, ~6 row temps.
    itemsize = jnp.dtype(x.dtype).itemsize
    pred_col = -(-(C * itemsize) // 32) * 32      # input-dtype packed column
    f32_col = -(-C // 8) * 32                     # f32 temporary column
    per_pixel = 2 * pred_col + 4 * f32_col + 10 * 32
    cap = max(128, (vmem_budget_bytes // per_pixel) // 128 * 128)
    if max_tile_pixels is not None:
        cap = min(cap, max(128, (int(max_tile_pixels) // 128) * 128))
    tile_p = P if P <= cap else cap
    tiles_total = -(-P // tile_p)

    # Pad the (small) target tensor with ignore_index so the ragged tail and
    # any undefined lanes of the last logits block mask themselves via
    # `t != ignore_index` — no per-step iota/compare in the kernel.
    P_pad = tiles_total * tile_p
    if P_pad != P:
        t = jnp.pad(t, ((0, 0), (0, 0), (0, P_pad - P)),
                    constant_values=int(ignore_index))

    # Pixel-split parallel axis: on v7x (2 TensorCores) a B == 1 workload would
    # otherwise leave half the chip idle.  Only split when it divides the tile
    # count exactly so no block index ever goes out of range.
    n_split = 2 if (B == 1 and tiles_total >= 2 and tiles_total % 2 == 0) else 1
    tiles_per_split = tiles_total // n_split
    grid = (B, n_split, tiles_per_split)

    has_weight = weight is not None
    kernel = functools.partial(
        _focal_ce_kernel, gamma=float(gamma), ignore_index=int(ignore_index),
        has_weight=has_weight)

    logits_spec_kwargs = {}
    if logits_buffer_count is not None:
        # deeper buffering knob for v5e-style DMA-latency hiding (sweepable)
        logits_spec_kwargs["pipeline_mode"] = pl.Buffered(int(logits_buffer_count))

    in_specs = [
        pl.BlockSpec((1, C, tile_p),
                     lambda b, s, j: (b, 0, s * tiles_per_split + j),
                     **logits_spec_kwargs),
        pl.BlockSpec((1, 1, tile_p),
                     lambda b, s, j: (b, 0, s * tiles_per_split + j)),
    ]
    args = [x, t]
    if has_weight:
        w = jnp.asarray(weight, jnp.float32).reshape(C, 1)
        in_specs.append(pl.BlockSpec((C, 1), lambda b, s, j: (0, 0)))
        args.append(w)

    # Derive the compiler VMEM limit from the actual computed footprint.
    footprint = per_pixel * tile_p + (2 << 20)
    vmem_limit = max(int(footprint * 1.5), 32 * 1024 * 1024)
    vmem_limit = min(vmem_limit,
                     int(0.9 * vmem_capacity) if vmem_capacity
                     else 128 * 1024 * 1024)
    vmem_limit = max(vmem_limit, footprint)

    sum_part, cnt_part = pl.pallas_call(
        kernel,
        out_shape=(jax.ShapeDtypeStruct((B * n_split, 1, 128), jnp.float32),
                   jax.ShapeDtypeStruct((B * n_split, 1, 128), jnp.float32)),
        grid_spec=pltpu.PrefetchScalarGridSpec(
            num_scalar_prefetch=0,
            grid=grid,
            in_specs=in_specs,
            out_specs=(
                pl.BlockSpec((1, 1, 128), lambda b, s, j: (b * n_split + s, 0, 0)),
                pl.BlockSpec((1, 1, 128), lambda b, s, j: (b * n_split + s, 0, 0)),
            ),
            scratch_shapes=[pltpu.VMEM((1, tile_p), jnp.float32),
                            pltpu.VMEM((1, tile_p), jnp.float32)],
        ),
        compiler_params=pltpu.CompilerParams(
            # (b, split) axes are independent -> both v7x TensorCores get work;
            # the pixel-tile axis carries the scratch accumulator -> arbitrary.
            dimension_semantics=("parallel", "parallel", "arbitrary"),
            vmem_limit_bytes=vmem_limit,
        ),
    )(*args)

    # tiny cross-(batch, split) reduction of the partials in plain JAX
    loss_sum = jnp.sum(sum_part[:, 0, 0])
    keep_cnt = jnp.sum(cnt_part[:, 0, 0])
    if size_average:
        return loss_sum / keep_cnt
    return loss_sum


def _reference_loss(preds, target, *, gamma=1.0, size_average=True,
                    ignore_index=-100, weight=None):
    """Pure-JAX reference mirroring the PyTorch module."""
    if preds.ndim > 2:
        C = preds.shape[1]
        p = jnp.moveaxis(preds, 1, -1).reshape(-1, C)
    else:
        p = preds
    t = target.reshape(-1)
    keep = t != ignore_index
    logp = jax.nn.log_softmax(p.astype(jnp.float32), axis=1)
    safe_t = jnp.where(keep, t, 0).astype(jnp.int32)[:, None]
    logpt = jnp.take_along_axis(logp, safe_t, axis=1)[:, 0]
    pt = jnp.exp(logpt)
    loss = -1.0 * (1.0 - pt) ** gamma * logpt
    if weight is not None:
        loss = loss * jnp.take(jnp.asarray(weight, jnp.float32), safe_t[:, 0])
    loss = jnp.where(keep, loss, 0.0)
    if size_average:
        return jnp.sum(loss) / jnp.sum(keep)
    return jnp.sum(loss)


if __name__ == "__main__":
    key = jax.random.PRNGKey(0)
    k1, k2, k3, k4, k5, k6, k7, k8, k9 = jax.random.split(key, 9)

    # Test 1: canonical 4-D segmentation logits, no class weights, mean.
    N, C, H, W = 2, 4, 16, 16
    preds = jax.random.normal(k1, (N, C, H, W), dtype=jnp.float32)
    target = jax.random.randint(k2, (N, H, W), 0, C, dtype=jnp.int32)
    ignore = jax.random.uniform(k3, (N, H, W)) < 0.1
    target = jnp.where(ignore, -100, target)

    out = jax.block_until_ready(focal_ce_loss(preds, target, gamma=1.0))
    ref = _reference_loss(preds, target, gamma=1.0)
    np.testing.assert_allclose(np.asarray(out), np.asarray(ref),
                               rtol=1e-4, atol=1e-4)

    # Test 2: class weights + gamma=2 specialization + sum reduction.
    wvec = jnp.array([0.5, 1.0, 2.0, 1.5], jnp.float32)
    out2 = jax.block_until_ready(
        focal_ce_loss(preds, target, gamma=2.0, size_average=False, weight=wvec))
    ref2 = _reference_loss(preds, target, gamma=2.0, size_average=False,
                           weight=wvec)
    np.testing.assert_allclose(np.asarray(out2), np.asarray(ref2),
                               rtol=1e-4, atol=1e-4)

    # Test 3: ragged pixel tiling (P=225 not a tile multiple) -> wrapper pads
    # targets with ignore_index; multi-step accumulation across the
    # "arbitrary" grid axis.
    H3 = W3 = 15
    preds3 = jax.random.normal(k4, (N, C, H3, W3), dtype=jnp.float32)
    target3 = jax.random.randint(k5, (N, H3, W3), 0, C, dtype=jnp.int32)
    ignore3 = jax.random.uniform(k6, (N, H3, W3)) < 0.1
    target3 = jnp.where(ignore3, -100, target3)
    out3 = jax.block_until_ready(
        focal_ce_loss(preds3, target3, gamma=1.0, max_tile_pixels=128))
    ref3 = _reference_loss(preds3, target3, gamma=1.0)
    np.testing.assert_allclose(np.asarray(out3), np.asarray(ref3),
                               rtol=1e-4, atol=1e-4)

    # Test 4: B == 1 triggers the pixel-split parallel axis (grid (1, 2, 1))
    # so both v7x TensorCores get work; fractional gamma exercises the
    # clamped-pow path.
    preds4 = jax.random.normal(k7, (1, C, 16, 16), dtype=jnp.float32)
    target4 = jax.random.randint(k8, (1, 16, 16), 0, C, dtype=jnp.int32)
    ignore4 = jax.random.uniform(k9, (1, 16, 16)) < 0.1
    target4 = jnp.where(ignore4, -100, target4)
    out4 = jax.block_until_ready(
        focal_ce_loss(preds4, target4, gamma=1.5, max_tile_pixels=128))
    ref4 = _reference_loss(preds4, target4, gamma=1.5)
    np.testing.assert_allclose(np.asarray(out4), np.asarray(ref4),
                               rtol=1e-4, atol=1e-4)

    print("KERNEL_OK")
</pallas_src>

<mosaic_0001>
module attributes {stable_mosaic.version = 11 : i64} {
  func.func @_focal_ce_kernel(%arg0: i32, %arg1: i32, %arg2: i32, %arg3: memref<1x4x256xf32, #tpu.memory_space<vmem>>, %arg4: memref<1x1x256xi32, #tpu.memory_space<vmem>>, %arg5: memref<1x1x128xf32, #tpu.memory_space<vmem>>, %arg6: memref<1x1x128xf32, #tpu.memory_space<vmem>>, %arg7: memref<1x256xf32, #tpu.memory_space<vmem>>, %arg8: memref<1x256xf32, #tpu.memory_space<vmem>>) attributes {dimension_semantics = [#tpu.dimension_semantics<parallel>, #tpu.dimension_semantics<parallel>, #tpu.dimension_semantics<arbitrary>], iteration_bounds = array<i64: 2, 1, 1>, scalar_prefetch = 0 : i64, scratch_operands = 2 : i64, tpu.core_type = #tpu.core_type<tc>, window_params = [{transform_indices = @transform_0, window_bounds = array<i64: 1, 4, 256>}, {transform_indices = @transform_1, window_bounds = array<i64: 1, 1, 256>}, {transform_indices = @transform_2, window_bounds = array<i64: 1, 1, 128>}, {transform_indices = @transform_3, window_bounds = array<i64: 1, 1, 128>}]} {
    %c0_i32 = arith.constant 0 : i32
    %0 = arith.cmpi eq, %arg2, %c0_i32 : i32
    %1 = arith.extui %0 : i1 to i32
    %c0_i32_0 = arith.constant 0 : i32
    %2 = arith.cmpi ne, %1, %c0_i32_0 : i32
    scf.if %2 {
      %cst_24 = arith.constant 0.000000e+00 : f32
      %49 = vector.broadcast %cst_24 : f32 to vector<1x256xf32>
      %c0_25 = arith.constant 0 : index
      %c0_26 = arith.constant 0 : index
      %50 = vector.load %arg7[%c0_25, %c0_26] : memref<1x256xf32, #tpu.memory_space<vmem>>, vector<1x256xf32>
      tpu.vector_store %arg7[%c0_25, %c0_26], %49 {strides = array<i32>} : memref<1x256xf32, #tpu.memory_space<vmem>>, vector<1x256xf32>,
      %cst_27 = arith.constant 0.000000e+00 : f32
      %51 = vector.broadcast %cst_27 : f32 to vector<1x256xf32>
      %c0_28 = arith.constant 0 : index
      %c0_29 = arith.constant 0 : index
      %52 = vector.load %arg8[%c0_28, %c0_29] : memref<1x256xf32, #tpu.memory_space<vmem>>, vector<1x256xf32>
      tpu.vector_store %arg8[%c0_28, %c0_29], %51 {strides = array<i32>} : memref<1x256xf32, #tpu.memory_space<vmem>>, vector<1x256xf32>,
    } else {
    }
    %c0 = arith.constant 0 : index
    %c0_1 = arith.constant 0 : index
    %c0_2 = arith.constant 0 : index
    %3 = vector.load %arg3[%c0, %c0_1, %c0_2] : memref<1x4x256xf32, #tpu.memory_space<vmem>>, vector<1x4x256xf32>
    %4 = vector.shape_cast %3 : vector<1x4x256xf32> to vector<4x256xf32>
    %c0_3 = arith.constant 0 : index
    %c0_4 = arith.constant 0 : index
    %c0_5 = arith.constant 0 : index
    %5 = vector.load %arg4[%c0_3, %c0_4, %c0_5] : memref<1x1x256xi32, #tpu.memory_space<vmem>>, vector<1x1x256xi32>
    %6 = vector.shape_cast %5 : vector<1x1x256xi32> to vector<1x256xi32>
    %cst = arith.constant dense<0xFF800000> : vector<256xf32>
    %7 = vector.multi_reduction <maximumf>, %4, %cst [0] : vector<4x256xf32> to vector<256xf32>
    %8 = vector.shape_cast %7 : vector<256xf32> to vector<1x256xf32>
    %9 = vector.broadcast %8 : vector<1x256xf32> to vector<4x256xf32>
    %10 = arith.subf %4, %9 : vector<4x256xf32>
    %11 = math.exp %10 : vector<4x256xf32>
    %cst_6 = arith.constant dense<0.000000e+00> : vector<256xf32>
    %12 = vector.multi_reduction <add>, %11, %cst_6 [0] : vector<4x256xf32> to vector<256xf32>
    %13 = vector.shape_cast %12 : vector<256xf32> to vector<1x256xf32>
    %14 = math.log %13 : vector<1x256xf32>
    %15 = tpu.iota {dimensions = array<i32: 0>} : vector<4x256xi32>
    %16 = vector.broadcast %6 : vector<1x256xi32> to vector<4x256xi32>
    %17 = arith.cmpi eq, %15, %16 : vector<4x256xi32>
    %cst_7 = arith.constant 0.000000e+00 : f32
    %18 = vector.broadcast %cst_7 : f32 to vector<4x256xf32>
    %19 = arith.select %17, %10, %18 : vector<4x256xi1>, vector<4x256xf32>
    %cst_8 = arith.constant dense<0.000000e+00> : vector<256xf32>
    %20 = vector.multi_reduction <add>, %19, %cst_8 [0] : vector<4x256xf32> to vector<256xf32>
    %21 = vector.shape_cast %20 : vector<256xf32> to vector<1x256xf32>
    %cst_9 = arith.constant 0.000000e+00 : f32
    %22 = vector.broadcast %cst_9 : f32 to vector<4x256xf32>
    %23 = arith.select %17, %11, %22 : vector<4x256xi1>, vector<4x256xf32>
    %cst_10 = arith.constant dense<0.000000e+00> : vector<256xf32>
    %24 = vector.multi_reduction <add>, %23, %cst_10 [0] : vector<4x256xf32> to vector<256xf32>
    %25 = vector.shape_cast %24 : vector<256xf32> to vector<1x256xf32>
    %26 = arith.subf %21, %14 : vector<1x256xf32>
    %27 = tpu.reciprocal %13 : vector<1x256xf32> -> vector<1x256xf32>
    %28 = arith.mulf %25, %27 : vector<1x256xf32>
    %cst_11 = arith.constant 1.000000e+00 : f32
    %29 = vector.broadcast %cst_11 : f32 to vector<1x256xf32>
    %30 = arith.subf %29, %28 : vector<1x256xf32>
    %cst_12 = arith.constant 0.000000e+00 : f32
    %31 = vector.broadcast %cst_12 : f32 to vector<1x256xf32>
    %32 = arith.subf %31, %30 : vector<1x256xf32>
    %33 = arith.mulf %32, %26 : vector<1x256xf32>
    %c-100_i32 = arith.constant -100 : i32
    %34 = vector.broadcast %c-100_i32 : i32 to vector<1x256xi32>
    %35 = arith.cmpi ne, %6, %34 : vector<1x256xi32>
    %c0_13 = arith.constant 0 : index
    %c0_14 = arith.constant 0 : index
    %36 = vector.load %arg7[%c0_13, %c0_14] : memref<1x256xf32, #tpu.memory_space<vmem>>, vector<1x256xf32>
    %cst_15 = arith.constant 0.000000e+00 : f32
    %37 = vector.broadcast %cst_15 : f32 to vector<1x256xf32>
    %38 = arith.select %35, %33, %37 : vector<1x256xi1>, vector<1x256xf32>
    %39 = arith.addf %36, %38 : vector<1x256xf32>
    %c0_16 = arith.constant 0 : index
    %c0_17 = arith.constant 0 : index
    %40 = vector.load %arg7[%c0_16, %c0_17] : memref<1x256xf32, #tpu.memory_space<vmem>>, vector<1x256xf32>
    tpu.vector_store %arg7[%c0_16, %c0_17], %39 {strides = array<i32>} : memref<1x256xf32, #tpu.memory_space<vmem>>, vector<1x256xf32>,
    %c0_18 = arith.constant 0 : index
    %c0_19 = arith.constant 0 : index
    %41 = vector.load %arg8[%c0_18, %c0_19] : memref<1x256xf32, #tpu.memory_space<vmem>>, vector<1x256xf32>
    %42 = arith.extui %35 : vector<1x256xi1> to vector<1x256xi32>
    %43 = arith.sitofp %42 : vector<1x256xi32> to vector<1x256xf32>
    %44 = arith.addf %41, %43 : vector<1x256xf32>
    %c0_20 = arith.constant 0 : index
    %c0_21 = arith.constant 0 : index
    %45 = vector.load %arg8[%c0_20, %c0_21] : memref<1x256xf32, #tpu.memory_space<vmem>>, vector<1x256xf32>
    tpu.vector_store %arg8[%c0_20, %c0_21], %44 {strides = array<i32>} : memref<1x256xf32, #tpu.memory_space<vmem>>, vector<1x256xf32>,
    %c0_i32_22 = arith.constant 0 : i32
    %46 = arith.cmpi eq, %arg2, %c0_i32_22 : i32
    %47 = arith.extui %46 : i1 to i32
    %c0_i32_23 = arith.constant 0 : i32
    %48 = arith.cmpi ne, %47, %c0_i32_23 : i32
    scf.if %48 {
      %c0_24 = arith.constant 0 : index
      %c0_25 = arith.constant 0 : index
      %49 = vector.load %arg7[%c0_24, %c0_25] : memref<1x256xf32, #tpu.memory_space<vmem>>, vector<1x256xf32>
      %50 = vector.shape_cast %49 : vector<1x256xf32> to vector<1x1x256xf32>
      %cst_26 = arith.constant dense<0.000000e+00> : vector<1xf32>
      %51 = vector.multi_reduction <add>, %50, %cst_26 [1, 2] : vector<1x1x256xf32> to vector<1xf32>
      %52 = vector.shape_cast %51 : vector<1xf32> to vector<1x1x1xf32>
      %53 = vector.extract %52[0, 0, 0] : f32 from vector<1x1x1xf32>
      %54 = vector.broadcast %53 : f32 to vector<1x1x128xf32>
      %c0_27 = arith.constant 0 : index
      %c0_28 = arith.constant 0 : index
      %c0_29 = arith.constant 0 : index
      %55 = vector.load %arg5[%c0_27, %c0_28, %c0_29] : memref<1x1x128xf32, #tpu.memory_space<vmem>>, vector<1x1x128xf32>
      tpu.vector_store %arg5[%c0_27, %c0_28, %c0_29], %54 {strides = array<i32>} : memref<1x1x128xf32, #tpu.memory_space<vmem>>, vector<1x1x128xf32>,
      %c0_30 = arith.constant 0 : index
      %c0_31 = arith.constant 0 : index
      %56 = vector.load %arg8[%c0_30, %c0_31] : memref<1x256xf32, #tpu.memory_space<vmem>>, vector<1x256xf32>
      %57 = vector.shape_cast %56 : vector<1x256xf32> to vector<1x1x256xf32>
      %cst_32 = arith.constant dense<0.000000e+00> : vector<1xf32>
      %58 = vector.multi_reduction <add>, %57, %cst_32 [1, 2] : vector<1x1x256xf32> to vector<1xf32>
      %59 = vector.shape_cast %58 : vector<1xf32> to vector<1x1x1xf32>
      %60 = vector.extract %59[0, 0, 0] : f32 from vector<1x1x1xf32>
      %61 = vector.broadcast %60 : f32 to vector<1x1x128xf32>
      %c0_33 = arith.constant 0 : index
      %c0_34 = arith.constant 0 : index
      %c0_35 = arith.constant 0 : index
      %62 = vector.load %arg6[%c0_33, %c0_34, %c0_35] : memref<1x1x128xf32, #tpu.memory_space<vmem>>, vector<1x1x128xf32>
      tpu.vector_store %arg6[%c0_33, %c0_34, %c0_35], %61 {strides = array<i32>} : memref<1x1x128xf32, #tpu.memory_space<vmem>>, vector<1x1x128xf32>,
    } else {
    }
    return
  }
  func.func @transform_0(%arg0: i32, %arg1: i32, %arg2: i32) -> (i32, i32, i32) {
    %c1_i32 = arith.constant 1 : i32
    %0 = arith.muli %arg1, %c1_i32 : i32
    %1 = arith.addi %0, %arg2 : i32
    %c0_i32 = arith.constant 0 : i32
    %c0_i32_0 = arith.constant 0 : i32
    return %arg0, %c0_i32, %1 : i32, i32, i32
  }
  func.func @transform_1(%arg0: i32, %arg1: i32, %arg2: i32) -> (i32, i32, i32) {
    %c1_i32 = arith.constant 1 : i32
    %0 = arith.muli %arg1, %c1_i32 : i32
    %1 = arith.addi %0, %arg2 : i32
    %c0_i32 = arith.constant 0 : i32
    %c0_i32_0 = arith.constant 0 : i32
    return %arg0, %c0_i32, %1 : i32, i32, i32
  }
  func.func @transform_2(%arg0: i32, %arg1: i32, %arg2: i32) -> (i32, i32, i32) {
    %c1_i32 = arith.constant 1 : i32
    %0 = arith.muli %arg0, %c1_i32 : i32
    %1 = arith.addi %0, %arg1 : i32
    %c0_i32 = arith.constant 0 : i32
    %c0_i32_0 = arith.constant 0 : i32
    %c0_i32_1 = arith.constant 0 : i32
    return %1, %c0_i32, %c0_i32_0 : i32, i32, i32
  }
  func.func @transform_3(%arg0: i32, %arg1: i32, %arg2: i32) -> (i32, i32, i32) {
    %c1_i32 = arith.constant 1 : i32
    %0 = arith.muli %arg0, %c1_i32 : i32
    %1 = arith.addi %0, %arg1 : i32
    %c0_i32 = arith.constant 0 : i32
    %c0_i32_0 = arith.constant 0 : i32
    %c0_i32_1 = arith.constant 0 : i32
    return %1, %c0_i32, %c0_i32_0 : i32, i32, i32
  }
}

</mosaic_0001>

<bundles_post_ra>
// kernel: tpu_custom_call.1
= control target key start
LH: loop header
LB: loop body
LE: loop exit
PB: predicated region body
PF: predicated region fallthrough
CT: control target
= control target key end

     0   :  { %9 = vsyncpa [#allocation5], 0  ;;  %s1203_s0 = inlined_call_operand.hbm [shape: f32[2,4,256], index: 0, kind: input, shape index: {}]   ;;  %s1204_s1 = inlined_call_operand.hbm [shape: s32[2,1,256], index: 1, kind: input, shape index: {}]   ;;  %s1205_s2 = inlined_call_operand.hbm [shape: f32[2,1,128], index: 2, kind: output, shape index: {0}]   ;;  %s1206_s3 = inlined_call_operand.hbm [shape: f32[2,1,128], index: 3, kind: output, shape index: {1}]  }
   0x1   :  { %11 = vsyncpa [#allocation5 + $0x1], 0 }
   0x2   :  { %12 = vsyncpa [#allocation8], 0 }
   0x3   :  { %14 = vsyncpa [#allocation8 + $0x1], 0 }
   0x4   :  { %15 = vsyncpa [#allocation6], 0 }
   0x5   :  { %17 = vsyncpa [#allocation6 + $0x1], 0 }
   0x6   :  { %18 = vsyncpa [#allocation11], 0 }
   0x7   :  { %20 = vsyncpa [#allocation11 + $0x1], 0  ;;  %s968_s12 = smov 0   ;;  %s970_s13 = smov 0  }
   0x8   :  { %s972_s14 = smov 0   ;;  %s974_s15 = smov 0  }
   0x9   :  { %s976_s16 = smov 0   ;;  %s978_s17 = smov 0  }
   0xa LB: > { %s664_s18 = sadd.s32 4294967295, %s945_s17   ;;  %s665_s19 = sadd.s32 4294967294, %s945_s17   ;;  %s945_s17 = sphi %s978_s17, %s26_s17   ;;  %s941_s16 = sphi %s976_s16, %s1226_s16   ;;  %s937_s15 = sphi %s974_s15, %s1225_s15   ;;  %s933_s14 = sphi %s972_s14, %s1224_s14   ;;  %s929_s13 = sphi %s970_s13, %s1223_s13   ;;  %s925_s12 = sphi %s968_s12, %s1222_s12  }
   0xb   : > { %s45_s20 = sadd.s32 1, %s941_s16  ;;  %s56_s21 = sadd.s32 1, %s933_s14 }
   0xc   : > { %p47_p0 = scmp.ge.s32.totalorder %s45_s20, 2  ;;  %p63_p1 = scmp.ne.s32.totalorder %s933_s14, %s929_s13 }
   0xd   : > { %p64_p2 = scmp.eq.s32.totalorder %s945_s17, 0  ;;  %p69_p3 = scmp.ne.s32.totalorder %s929_s13, %s925_s12 }
   0xe   : > { %s1228_s20 = smov (%p47_p0, %s45_s20), 0  ;;  %p70_p5 = scmp.eq.s32.totalorder %s664_s18, 0 }
   0xf   : > { %p1009_p4 = por %p64_p2, %p63_p1  ;;  %s51_s23 = ssub.s32 %s941_s16, %s1228_s20 }
  0x10   : > { %p125_p6 = scmp.eq.s32.totalorder %s664_s18, 1  ;;  %p54_p7 = scmp.eq.s32.totalorder %s51_s23, 0 }
  0x11   : > { %p1015_p8 = por %p70_p5, %p69_p3  ;;  %p131_p10 = scmp.eq.s32.totalorder %s665_s19, 1 }
  0x12   : > { %p1019_p9 = por %p125_p6, %p63_p1  ;;  %p667_p12 = scmp.ge.s32.totalorder %s945_s17, 2 }
  0x13   : > { %s1024_s26 = scalar_select %p54_p7, %s933_s14, %s56_s21  }
  0x14   : > { %p1026_p11 = por %p131_p10, %p69_p3  ;;  %p706_p13 = scmp.lt.s32.totalorder %s945_s17, 2 }
  0x15   : > { %s179_s28 = sand.u32 1, %s933_s14   ;;  %s679_s30 = sshll.u32 %s941_s16, 3 }
  0x16   : > { %s668_s29 = sshll.u32 %s179_s28, 3  ;;  %s191_s6 = scalar_lea.hbm %s1203_s0, %s679_s30 }
  0x17   : > { %s183_s7 = scalar_lea.vmem [#allocation4], %s668_s29  ;;  %s193_s9 = sshll.u32 %s191_s6, 4  ;;  %s194_s9 = int_to_ptr.hbm [resolvable:$true] %s193_s9 }
  0x18   : > { %s195_s8 = sshll.u32 %s183_s7, 4  ;;  %p1039_p0 = pnand %p706_p13, %p1009_p4  ;;  %s196_s8 = int_to_ptr.vmem [resolvable:$true] %s195_s8 }
  0x19   : > { %p673_p1 = scmp.ge.s32.totalorder %s945_s17, 1  ;;  %p222_p2 = scmp.lt.s32.totalorder %s945_s17, 3 }
  0x1a   : > { %s180_s11 = scalar_lea.sflag [#allocation5], %s179_s28  ;;  %s671_s18 = sshll.u32 %s179_s28, 1 }
  0x1b   : > { %695 = dma.hbm_to_vmem [thread:$0]  (!%p1039_p0), %s194_s9, 128, %s196_s8, %s180_s11  }
  0x1c   : > { %p223_p3 = pnand %p673_p1, %p222_p2  ;;  %s672_s19 = sshll.u32 %s941_s16, 1 }
  0x1d   : > { %s213_s29 = scalar_lea.hbm %s1204_s1, %s672_s19  ;;  %s206_s30 = scalar_lea.vmem [#allocation7], %s671_s18 }
  0x1e   : > { %s217_s22 = sshll.u32 %s206_s30, 4  ;;  %s215_s4 = sshll.u32 %s213_s29, 4  ;;  %s218_s22 = int_to_ptr.vmem [resolvable:$true] %s217_s22  ;;  %s216_s4 = int_to_ptr.hbm [resolvable:$true] %s215_s4 }
  0x1f   : > { %s203_s5 = scalar_lea.sflag [#allocation8], %s179_s28  ;;  %226 = sbr.rel (%p223_p3) target bundleno = 338 (0x152), region = 28 }
  0x20   : > { %698 = dma.hbm_to_vmem [thread:$0]  (!%p1039_p0), %s216_s4, 32, %s218_s22, %s203_s5  }
  0x21   : > { %s1054_s6 = sand.u32 (!%p223_p3), 1, %s929_s13  }
  0x22   : > { %s674_s7 = sshll.u32 (!%p223_p3), %s1054_s6, 3  ;;  %s229_s8 = scalar_lea.sflag (!%p223_p3), [#allocation5], %s1054_s6 }
  0x23   : > { %s232_s9 = scalar_lea.vmem (!%p223_p3), [#allocation4], %s674_s7 }
  0x24   : > { %908 = dma.done.wait (%p1015_p8), %s229_s8, 128  }
  0x25   : > { %910 = vsyncadd (%p1015_p8), %s229_s8, 4294967168  ;;  %s675_s28 = sshll.u32 %s1054_s6, 1  ;;  %s239_s10 = scalar_lea.sflag [#allocation8], %s1054_s6 }
  0x26   : > { %s1064_s11 = scalar_lea.vmem [#allocation7], %s675_s28 }
  0x27   : > { %912 = dma.done.wait (%p1015_p8), %s239_s10, 32  }
  0x28   : > { %914 = vsyncadd (%p1015_p8), %s239_s10, 4294967264  ;;  %v284_v0 = vlaneseq  ;;  %v947_v2 = vmov 0.0   ;;  %v290_v3 = vld [vmem:[%s232_s9] sm:$0xff]  ;;  %vm298_vm1 = vcmask 1043456   ;;  %v1084_v27 = vld [vmem:[%s1064_s11] sm:$0x3]  ;;  %s509_s19 = scalar_lea.hbm %s1205_s2, %s937_s15  ;;  %s523_s5 = scalar_lea.hbm %s1206_s3, %s937_s15 }
  0x29   : > { %293 = vst [vmem:[#allocation1] ss:$2 sm:$0xff] %v290_v3  ;;  %v347_v35 = vperm.slane %v1084_v27, 0  ;;  %v348_v36 = vperm.slane %v1084_v27, 1  ;;  %vm432_vm4 = vcmp.ne.s32.totalorder %v1084_v27, 4294967196  ;;  %vm437_vm13 = vcmask 1040384  }
  0x2a   : > { %vm1070_vm0 = vcmp.lt.s32.totalorder %v284_v0, 256  ;;  %v346_v32 = vshrl.u32 %v284_v0, 7  ;;  %s267_s21 = scalar_lea.vmem [#allocation9], %s1054_s6  ;;  %s513_s29 = sshll.u32 %s509_s19, 4  ;;  %s514_s29 = int_to_ptr.hbm [resolvable:$true] %s513_s29 }
  0x2b   : > { %288 = vst.msk [vmem:[#allocation2] sm:$0x3] %vm1070_vm0, %v947_v2  ;;  %s511_s23 = sshll.u32 %s267_s21, 4  ;;  %s496_s7 = scalar_lea.sflag [#allocation6], %s1054_s6  ;;  %s512_s23 = int_to_ptr.vmem [resolvable:$true] %s511_s23 }
  0x2c   : > { %289 = vst.msk [vmem:[#allocation3] sm:$0x3] %vm1070_vm0, %v947_v2  ;;  %vm1090_vm2 = vcmp.eq.s32.totalorder %v346_v32, %v347_v35  ;;  %vm1094_vm3 = vcmp.eq.s32.totalorder %v346_v32, %v348_v36  ;;  %s841_s8 = sshra.s32 %s514_s29, 4  ;;  %s847_s11 = scalar_lea.hbm %s1205_s2, 2  ;;  %s842_s8 = int_to_ptr.hbm [resolvable:$true] %s841_s8 }
  0x2d   : > { %s843_s9 = scalar_lea.hbm %s842_s8, 1  ;;  %p848_p7 = scmp.lt.s32.totalorder %s842_s8, %s1205_s2 }
  0x2e   : > { %p844_p4 = scmp.ne.s32.totalorder %s842_s8, %s843_s9  ;;  %p849_p8 = scmp.lt.s32.totalorder %s847_s11, %s843_s9 }
  0x30   : > { %v294_v4 = vld.sshfl [vmem:[#allocation1] sm:$0xff pattern:$0x75316420]  ;;  %v295_v5 = vld.sshfl [vmem:[#allocation1 + $0x8] sm:$0xff pattern:$0x75316420]  ;;  %p845_p5 = pnand %p844_p4, %p1019_p9  ;;  %p850_p10 = por %p849_p8, %p848_p7 }
  0x31   : > { %v299_v6 = vsel %vm298_vm1, %v294_v4, -inf  ;;  %v306_v7 = vsel %vm298_vm1, %v295_v5, -inf }
  0x32   : > { %v300_v8 = vrot.slane %v299_v6, 4  ;;  %v307_v9 = vrot.slane %v306_v7, 4  ;;  %p846_p6 = pneg %p845_p5 }
  0x33   : > { %v447_v5 = vld [vmem:[#allocation3] sm:$0x3] }
  0x34   : > { %v301_v10 = vmax.f32 %v299_v6, %v300_v8  ;;  %v308_v11 = vmax.f32 %v306_v7, %v307_v9  ;;  %v676_v6 = vsel %vm432_vm4, 1.0, %v947_v2  ;;  %p851_p13 = pnand %p850_p10, %p846_p6 }
  0x36   : > { %v302_v12 = vrot.slane %v301_v10, 2  ;;  %v309_v13 = vrot.slane %v308_v11, 2 }
  0x38   : > { %v303_v14 = vmax.f32 %v301_v10, %v302_v12  ;;  %v310_v15 = vmax.f32 %v308_v11, %v309_v13 }
  0x3a   : > { %v304_v16 = vrot.slane %v303_v14, 1  ;;  %v311_v17 = vrot.slane %v310_v15, 1 }
  0x3c   : > { %v305_v18 = vmax.f32 %v303_v14, %v304_v16  ;;  %v312_v19 = vmax.f32 %v310_v15, %v311_v17  ;;  %v450_v16 = vadd.f32 %v676_v6, %v447_v5 }
  0x3e   : > { %v315_v20 = vrot.slane %v312_v19, 4  ;;  %451 = vst.msk [vmem:[#allocation3] sm:$0x3] %vm1070_vm0, %v450_v16 }
  0x40   : > { %v316_v21 = vsel %vm298_vm1, %v305_v18, %v315_v20 }
  0x41   : > { %v318_v22 = vsub.f32 %v290_v3, %v316_v21 }
  0x43   : > { %v319_v23 = vmul.f32 1.442695, %v318_v22 }
  0x45   : > { %757 = vpow2.f32 %v319_v23 }
  0x4b   : > { %v758_v24 = vpop.eup %757 }
  0x4c   : > { %322 = vst [vmem:[#allocation1] ss:$2 sm:$0xff] %v758_v24 }
  0x53   : > { %v323_v25 = vld.sshfl [vmem:[#allocation1] sm:$0xff pattern:$0x75316420]  ;;  %v324_v26 = vld.sshfl [vmem:[#allocation1 + $0x8] sm:$0xff pattern:$0x75316420] }
  0x54   : > { %v327_v28 = vsel %vm298_vm1, %v323_v25, 0.0  ;;  %v334_v29 = vsel %vm298_vm1, %v324_v26, 0.0  ;;  %352 = vst [vmem:[#allocation1] ss:$2 sm:$0xff] %v318_v22 }
  0x55   : > { %v328_v30 = vrot.slane %v327_v28, 4  ;;  %v335_v31 = vrot.slane %v334_v29, 4 }
  0x57   : > { %v329_v33 = vadd.f32 %v328_v30, %v327_v28  ;;  %v336_v34 = vadd.f32 %v335_v31, %v334_v29 }
  0x59   : > { %v330_v37 = vrot.slane %v329_v33, 2  ;;  %v337_v38 = vrot.slane %v336_v34, 2 }
  0x5b   : > { %v331_v39 = vadd.f32 %v330_v37, %v329_v33  ;;  %v338_v40 = vadd.f32 %v337_v38, %v336_v34  ;;  %v353_v43 = vld.sshfl [vmem:[#allocation1] sm:$0xff pattern:$0x75316420]  ;;  %v354_v44 = vld.sshfl [vmem:[#allocation1 + $0x8] sm:$0xff pattern:$0x75316420] }
  0x5c   : > { %v357_v45 = vsel %vm1090_vm2, %v353_v43, 0.0  ;;  %v358_v46 = vsel %vm1094_vm3, %v354_v44, 0.0  ;;  %373 = vst [vmem:[#allocation1] ss:$2 sm:$0xff] %v758_v24 }
  0x5d   : > { %v332_v47 = vrot.slane %v331_v39, 1  ;;  %v359_v48 = vsel %vm298_vm1, %v357_v45, 0.0  ;;  %v366_v50 = vsel %vm298_vm1, %v358_v46, 0.0  ;;  %v339_v52 = vrot.slane %v338_v40, 1 }
  0x5e   : > { %v360_v49 = vrot.slane %v359_v48, 4  ;;  %v367_v53 = vrot.slane %v366_v50, 4 }
  0x5f   : > { %v333_v51 = vadd.f32 %v332_v47, %v331_v39  ;;  %v1104_v55 = vadd.f32 %v339_v52, %v338_v40 }
  0x60   : > { %v361_v54 = vadd.f32 %v360_v49, %v359_v48  ;;  %v368_v60 = vadd.f32 %v367_v53, %v366_v50 }
  0x61   : > { %759 = vrcp.f32 %v333_v51  ;;  %v405_v10 = vand.u32 2147483647, %v333_v51  ;;  %vm401_vm5 = vweird.f32 %v333_v51  ;;  %v407_v15 = vand.u32 2147483648, %v333_v51 }
  0x62   : > { %v362_v63 = vrot.slane %v361_v54, 2  ;;  %761 = vrcp.f32 %v1104_v55  ;;  %v369_v8 = vrot.slane %v368_v60, 2  ;;  %vm415_vm8 = vweird.f32 %v1104_v55 }
  0x63   : > { %v374_v56 = vld.sshfl [vmem:[#allocation1] sm:$0xff pattern:$0x75316420]  ;;  %v375_v57 = vld.sshfl [vmem:[#allocation1 + $0x8] sm:$0xff pattern:$0x75316420]  ;;  %763 = vlog2.f32 %v333_v51 }
  0x64   : > { %v378_v58 = vsel %vm1090_vm2, %v374_v56, 0.0  ;;  %v379_v59 = vsel %vm1094_vm3, %v375_v57, 0.0  ;;  %v363_v11 = vadd.f32 %v362_v63, %v361_v54  ;;  %765 = vlog2.f32 %v1104_v55 }
  0x65   : > { %v380_v61 = vsel %vm298_vm1, %v378_v58, 0.0  ;;  %v387_v62 = vsel %vm298_vm1, %v379_v59, 0.0  ;;  %v370_v20 = vadd.f32 %v369_v8, %v368_v60  ;;  %vm1118_vm7 = vcmp.eq.f32.partialorder %v405_v10, 8.507059e+37 }
  0x66   : > { %v381_v0 = vrot.slane %v380_v61, 4  ;;  %v388_v3 = vrot.slane %v387_v62, 4  ;;  %v364_v22 = vrot.slane %v363_v11, 1  ;;  %v408_v29 = vor.u32 1.1754944e-38, %v407_v15 }
  0x67   : > { %v760_v7 = vpop.eup %759  ;;  %v419_v30 = vand.u32 2147483647, %v1104_v55  ;;  %v421_v31 = vand.u32 2147483648, %v1104_v55  ;;  %v371_v36 = vrot.slane %v370_v20, 1 }
  0x68   : > { %v382_v4 = vadd.f32 %v381_v0, %v380_v61  ;;  %v389_v9 = vadd.f32 %v388_v3, %v387_v62  ;;  %v397_v13 = vmul.f32 %v760_v7, %v333_v51  ;;  %vm402_vm6 = vweird.f32 %v760_v7  ;;  %v762_v19 = vpop.eup %761  ;;  %v433_v61 = vld [vmem:[#allocation2] sm:$0x3] }
  0x69   : > { %v411_v25 = vmul.f32 %v762_v19, %v1104_v55  ;;  %v764_v26 = vpop.eup %763  ;;  %vm1127_vm9 = vmor %vm401_vm5, %vm402_vm6  ;;  %vm416_vm10 = vweird.f32 %v762_v19  ;;  %v365_v39 = vadd.f32 %v364_v22, %v363_v11  ;;  %v422_v43 = vor.u32 1.1754944e-38, %v421_v31 }
  0x6a   : > { %v383_v12 = vrot.slane %v382_v4, 2  ;;  %v390_v14 = vrot.slane %v389_v9, 2  ;;  %v398_v18 = vsub.f32 1.0, %v397_v13  ;;  %v766_v37 = vpop.eup %765  ;;  %v342_v38 = vmul.f32 0.6931472, %v764_v26  ;;  %vm417_vm11 = vmor %vm415_vm8, %vm416_vm10 }
  0x6b   : > { %v412_v35 = vsub.f32 1.0, %v411_v25  ;;  %vm420_vm12 = vcmp.eq.f32.partialorder %v419_v30, 8.507059e+37  ;;  %v372_v47 = vadd.f32 %v371_v36, %v370_v20  ;;  %v344_v48 = vmul.f32 0.6931472, %v766_v37 }
  0x6c   : > { %v384_v17 = vadd.f32 %v383_v12, %v382_v4  ;;  %v391_v2 = vadd.f32 %v390_v14, %v389_v9  ;;  %v399_v24 = vmul.f32 %v760_v7, %v398_v18  ;;  %v394_v49 = vsub.f32 %v365_v39, %v342_v38  ;;  %v475_v4 = vld [vmem:[#allocation3] sm:$0x3] }
  0x6d   : > { %v413_v41 = vmul.f32 %v762_v19, %v412_v35  ;;  %v395_v56 = vsub.f32 %v372_v47, %v344_v48  ;;  %v477_v9 = vperm.slane %v475_v4, 0  ;;  %v478_v10 = vperm.slane %v475_v4, 1 }
  0x6e   : > { %v385_v23 = vrot.slane %v384_v17, 1  ;;  %v392_v33 = vrot.slane %v391_v2, 1  ;;  %v400_v34 = vadd.f32 %v760_v7, %v399_v24 }
  0x6f   : > { %v414_v45 = vadd.f32 %v762_v19, %v413_v41  ;;  %v481_v12 = vsel %vm437_vm13, %v477_v9, 0.0  ;;  %v482_v27 = vsel %vm437_vm13, %v478_v10, 0.0 }
  0x70   : > { %v386_v32 = vadd.f32 %v385_v23, %v384_v17  ;;  %v404_v40 = vsel %vm1127_vm9, %v760_v7, %v400_v34  ;;  %v393_v44 = vadd.f32 %v392_v33, %v391_v2  ;;  %v483_v13 = vadd.f32 %v482_v27, %v481_v12 }
  0x71   : > { %v409_v42 = vsel %vm1118_vm7, %v408_v29, %v404_v40  ;;  %v418_v50 = vsel %vm417_vm11, %v762_v19, %v414_v45 }
  0x72   : > { %v424_v46 = vmul.f32 %v409_v42, %v386_v32  ;;  %v423_v52 = vsel %vm420_vm12, %v422_v43, %v418_v50 }
  0x73   : > { %v425_v53 = vmul.f32 %v423_v52, %v393_v44 }
  0x74   : > { %v426_v51 = vsub.f32 1.0, %v424_v46 }
  0x75   : > { %v427_v57 = vsub.f32 1.0, %v425_v53 }
  0x76   : > { %v428_v54 = vsub.f32 0.0, %v426_v51 }
  0x77   : > { %v429_v59 = vsub.f32 0.0, %v427_v57 }
  0x78   : > { %v430_v58 = vmul.f32 %v428_v54, %v394_v49 }
  0x79   : > { %v431_v60 = vmul.f32 %v429_v59, %v395_v56 }
  0x7b   : > { %v436_v55 = vrot.slane %v431_v60, 7 }
  0x7d   : > { %v438_v62 = vsel %vm437_vm13, %v430_v58, %v436_v55 }
  0x7e   : > { %v440_v63 = vsel %vm432_vm4, %v438_v62, 0.0 }
  0x7f   : > { %v441_v0 = vadd.f32 %v440_v63, %v433_v61 }
  0x81   : > { %446 = vst.msk [vmem:[#allocation2] sm:$0x3] %vm1070_vm0, %v441_v0 }
  0x88   : > { %v455_v3 = vld [vmem:[#allocation2] sm:$0x3] }
  0x89   : > { %v457_v5 = vperm.slane %v455_v3, 0  ;;  %v458_v6 = vperm.slane %v455_v3, 1 }
  0x8b   : > { %v461_v7 = vsel %vm437_vm13, %v457_v5, 0.0  ;;  %v462_v8 = vsel %vm437_vm13, %v458_v6, 0.0 }
  0x8c   : > { %v463_v11 = vadd.f32 %v462_v8, %v461_v7 }
  0x8e   : > { %464 = vadd.xlane.f32.xlu0 %v463_v11 }
  0x96   : > { %484 = vadd.xlane.f32.xlu0 %v483_v13 }
 0x101   : > { %v465_v1 = vpop.xlane.xlu0 %464 }
 0x102   : > { %v466_v14 = vrot.slane %v465_v1, 4 }
 0x104   : > { %v467_v15 = vadd.f32 %v466_v14, %v465_v1 }
 0x106   : > { %v468_v16 = vrot.slane %v467_v15, 2 }
 0x108   : > { %v469_v17 = vadd.f32 %v468_v16, %v467_v15 }
 0x109   : > { %v485_v18 = vpop.xlane.xlu0 %484 }
 0x10a   : > { %v486_v19 = vrot.slane %v485_v18, 4  ;;  %v470_v20 = vrot.slane %v469_v17, 1 }
 0x10c   : > { %v487_v2 = vadd.f32 %v486_v19, %v485_v18  ;;  %v471_v21 = vadd.f32 %v470_v20, %v469_v17 }
 0x10e   : > { %v488_v22 = vrot.slane %v487_v2, 2  ;;  %680 = vpush %v471_v21 }
 0x110   : > { %v489_v23 = vadd.f32 %v488_v22, %v487_v2 }
 0x112   : > { %v490_v24 = vrot.slane %v489_v23, 1 }
 0x114   : > { %v491_v25 = vadd.f32 %v490_v24, %v489_v23 }
 0x116   : > { %682 = vpush %v491_v25 }
 0x13f   : > { %s681_s30 = spop %680 }
 0x140   : > { %v473_v26 = vstv %s681_s30 }
 0x141   : > { %474 = vst [vmem:[%s267_s21] sm:$0x1] %v473_v26 }
 0x142   : > { %854 = shalt.err (!%p851_p13)
}
 0x143   : > { %688 = dma.vmem_to_hbm [thread:$0]  (%p1019_p9), %s512_s23, 16, %s514_s29, %s496_s7  }
 0x144   : > { %s273_s15 = scalar_lea.vmem [#allocation10], %s1054_s6  ;;  %s527_s21 = sshll.u32 %s523_s5, 4  ;;  %s528_s21 = int_to_ptr.hbm [resolvable:$true] %s527_s21 }
 0x145   : > { %s525_s19 = sshll.u32 %s273_s15, 4  ;;  %s500_s22 = scalar_lea.sflag [#allocation11], %s1054_s6  ;;  %s526_s19 = int_to_ptr.vmem [resolvable:$true] %s525_s19 }
 0x146   : > { %s869_s4 = sshra.s32 %s528_s21, 4  ;;  %s875_s23 = scalar_lea.hbm %s1206_s3, 2  ;;  %s870_s4 = int_to_ptr.hbm [resolvable:$true] %s869_s4 }
 0x147   : > { %s683_s30 = spop %682  ;;  %s871_s8 = scalar_lea.hbm %s870_s4, 1 }
 0x148   : > { %v493_v28 = vstv %s683_s30  ;;  %p872_p0 = scmp.ne.s32.totalorder %s870_s4, %s871_s8  ;;  %p876_p3 = scmp.lt.s32.totalorder %s870_s4, %s1206_s3 }
 0x149   : > { %494 = vst [vmem:[%s273_s15] sm:$0x1] %v493_v28  ;;  %p877_p4 = scmp.lt.s32.totalorder %s875_s23, %s871_s8 }
 0x14a   : > { %p873_p1 = pnand %p872_p0, %p1019_p9 }
 0x14b   : > { %p878_p5 = por %p877_p4, %p876_p3 }
 0x14c   : > { %p874_p2 = pneg %p873_p1 }
 0x14e   : > { %p879_p6 = pnand %p878_p5, %p874_p2 }
 0x150   : > { %882 = shalt.err (!%p879_p6)
}
 0x151   : > { %689 = dma.vmem_to_hbm [thread:$0]  (%p1019_p9), %s526_s19, 16, %s528_s21, %s500_s22  }
 0x152 PF: > { %s539_s6 = sand.u32 1, %s925_s12   ;;  %p700_p7 = pnand %p667_p12, %p1026_p11 }
 0x153   : > { %s540_s5 = scalar_lea.sflag [#allocation6], %s539_s6 }
 0x154   : > { %p701_p8 = pneg %p700_p7 }
 0x156   : > { %916 = dma.done.wait (%p701_p8), %s540_s5, 16  }
 0x157   : > { %918 = vsyncadd (%p701_p8), %s540_s5, 4294967280  ;;  %s549_s10 = scalar_lea.sflag [#allocation11], %s539_s6 }
 0x158   : > { %920 = dma.done.wait (%p701_p8), %s549_s10, 16  }
 0x159   : > { %922 = vsyncadd (%p701_p8), %s549_s10, 4294967280  ;;  %s26_s17 = sadd.s32 1, %s945_s17   ;;  %s1222_s12 = smov %s929_s13 }
 0x15a   : > { %p23_p10 = scmp.ge.s32.totalorder %s26_s17, 4   ;;  %s1223_s13 = smov %s933_s14 }
 0x15b   : > { %s1224_s14 = smov %s1024_s26  ;;  %s1225_s15 = smov %s941_s16 }
 0x15c   : > { %s1226_s16 = smov %s1228_s20  ;;  %25 = sbr.rel (!%p23_p10) target bundleno = 10 (0xa), region = 111 }
 0x161   :  { %554 = vsyncpa [#allocation5], 1 }
 0x162   :  { %556 = vsyncpa [#allocation5 + $0x1], 1 }
 0x163   :  { %557 = vsyncpa [#allocation8], 1 }
 0x164   :  { %559 = vsyncpa [#allocation8 + $0x1], 1 }
 0x165   :  { %560 = vsyncpa [#allocation6], 1 }
 0x166   :  { %562 = vsyncpa [#allocation6 + $0x1], 1 }
 0x167   :  { %563 = vsyncpa [#allocation11], 1 }
 0x168   :  { %565 = vsyncpa [#allocation11 + $0x1], 1 }

</bundles_post_ra>
